<compile_context>
chip_gen: v6e
topology: v6e:2x2x1
jax: 0.10.0
libtpu: 0.0.40
codegen_flags: <defaults>
</compile_context>

<pallas_src>
import math

import jax
import jax.numpy as jnp
from jax.experimental import pallas as pl
from jax.experimental.pallas import tpu as pltpu

LN_EPS = 1e-5


def _patch_merge_kernel(x_ref, w_ref, wsum_ref, bias_ref, o_ref):
    # x_ref:    (TH, 2, W2, 2C)  row-pair tile; [:,0] = even input rows with
    #           [x0|x2] channel packing, [:,1] = odd rows with [x1|x3].
    # w_ref:    (2, 2C, N)       gamma-folded projection weight, split the same
    #           way (rows for [x0|x2] / rows for [x1|x3]).
    # wsum_ref: (1, N) f32       column sums of the full gamma-folded weight.
    # bias_ref: (1, N) f32       beta @ W.
    # o_ref:    (TH*W2, N)
    th, _, w2, c2 = x_ref.shape
    t = th * w2

    x = x_ref[...]
    # NOTE: the flatten to (tokens, 2C) is layout-free when W2 % 8 == 0;
    # otherwise Mosaic inserts a relayout copy (correct, just slower).
    xa = x[:, 0, :, :].reshape(t, c2)
    xb = x[:, 1, :, :].reshape(t, c2)

    # Single-pass LayerNorm statistics over the full 4C channels, in f32.
    xa32 = xa.astype(jnp.float32)
    xb32 = xb.astype(jnp.float32)
    inv_4c = 1.0 / (2.0 * c2)
    s1 = (jnp.sum(xa32, axis=-1, keepdims=True)
          + jnp.sum(xb32, axis=-1, keepdims=True))
    s2 = (jnp.sum(xa32 * xa32, axis=-1, keepdims=True)
          + jnp.sum(xb32 * xb32, axis=-1, keepdims=True))
    mean = s1 * inv_4c
    var = jnp.maximum(s2 * inv_4c - mean * mean, 0.0)
    rstd = jax.lax.rsqrt(var + LN_EPS)

    # Raw tiles straight to the MXU (f32 accumulation); normalization applied
    # afterwards on the narrow (t, N) result:
    #   LN(x) @ W = rstd * (x @ Wg - mean * colsum(Wg)) + beta @ W
    y = jnp.dot(xa, w_ref[0], preferred_element_type=jnp.float32)
    y = y + jnp.dot(xb, w_ref[1], preferred_element_type=jnp.float32)
    y = rstd * (y - mean * wsum_ref[...]) + bias_ref[...]
    o_ref[...] = y.astype(o_ref.dtype)


def _vmem_config():
    """(vmem_limit_bytes, tile_budget_bytes, target_tokens) per TPU generation."""
    try:
        cap = int(getattr(pltpu.get_tpu_info(), "vmem_capacity_bytes",
                          64 * 1024 * 1024))
    except Exception:
        cap = 64 * 1024 * 1024
    if cap >= 100 * 1024 * 1024:                     # v5e / v6e: 128 MiB VMEM
        return 96 * 1024 * 1024, 24 * 1024 * 1024, 2048
    return 40 * 1024 * 1024, 10 * 1024 * 1024, 1024  # v7x: 64 MiB VMEM


def _pick_tile_rows(bh2, w2, k2, n_out, in_bytes, out_bytes, w_bytes,
                    target_tokens, tile_budget_bytes):
    """Pick TH (merged row-pairs per grid step) under an explicit VMEM budget."""
    m8 = 8 // math.gcd(max(w2, 1), 8)   # TH granularity so (TH*W2) % 8 == 0
    if bh2 <= m8:
        return bh2                       # single full block

    # Grid-invariant operands (double-buffered by the default pipeline).
    fixed = 2 * (2 * k2 * n_out) * w_bytes + 2 * 2 * n_out * 4

    def tile_bytes(t):
        toks = t * w2
        io = (2 * (2 * toks * k2) * in_bytes     # (TH,2,W2,2C) input, dbl-buf
              + 2 * (toks * n_out) * out_bytes)  # output block, dbl-buf
        compute = (2 * toks * k2 * 4             # f32 stat copies of xa/xb
                   + toks * n_out * 4)           # f32 matmul accumulator
        return io + compute

    th = max(m8, target_tokens // max(w2, 1))
    # Grid shaping: prefer >= 8 balanced steps (2 TCs x >= 4) when there is
    # enough work, otherwise just keep >= 2 steps so the grid can split.
    if bh2 >= 8 * m8 and bh2 * w2 >= 8 * 256:
        th = min(th, (bh2 // 8 // m8) * m8)
    elif bh2 >= 2 * m8:
        th = min(th, max(m8, ((bh2 + 1) // 2 // m8) * m8))
    th = min(th, (bh2 // m8) * m8)
    th = max(m8, (th // m8) * m8)

    while th > m8 and fixed + tile_bytes(th) > tile_budget_bytes:
        th = max(m8, ((th // 2) // m8) * m8)
    return th


def patch_merging_forward(x, H, W, gamma, beta, w):
    """PatchMerging forward.

    x:     (B, L, C) with L == H * W
    gamma: (4C,)  LayerNorm weight          beta: (4C,)  LayerNorm bias
    w:     (4C, 2C) reduction weight (transposed torch weight)
    returns (B, ceil(H/2) * ceil(W/2), 2C)
    """
    B, L, C = x.shape
    assert L == H * W
    K2 = 2 * C        # packed channels per input row ([x_even_col | x_odd_col])
    NOUT = 2 * C      # projection output channels

    xr = x.reshape(B, H, W, C)
    if (H % 2 == 1) or (W % 2 == 1):        # matches F.pad(x, (0, W%2, 0, H%2))
        xr = jnp.pad(xr, ((0, 0), (0, H % 2), (0, W % 2), (0, 0)))
    Hp, Wp = xr.shape[1], xr.shape[2]
    H2, W2 = Hp // 2, Wp // 2
    BH2 = B * H2
    M = BH2 * W2

    # Metadata-only reshape:
    #   x4[bh2, r, j, :] = concat(x[b, 2i+r, 2j, :], x[b, 2i+r, 2j+1, :])
    x4 = xr.reshape(BH2, 2, W2, K2)

    # MXU operand dtype: bf16 inputs keep bf16 operands, everything else f32.
    cdt = jnp.bfloat16 if x.dtype == jnp.bfloat16 else jnp.float32

    # Fold the LayerNorm affine into the projection (all prep in f32) and
    # permute rows from torch's [x0,x1,x2,x3] order to the [x0|x2] / [x1|x3]
    # row packing used by the kernel.
    w32 = w.astype(jnp.float32)
    g4 = gamma.astype(jnp.float32).reshape(4, C)
    wg4 = w32.reshape(4, C, NOUT) * g4[:, :, None]          # diag(gamma) @ W
    wa = jnp.concatenate([wg4[0], wg4[2]], axis=0)          # rows for [x0|x2]
    wb = jnp.concatenate([wg4[1], wg4[3]], axis=0)          # rows for [x1|x3]
    w_packed = jnp.stack([wa, wb]).astype(cdt)              # (2, K2, NOUT)
    wsum = (wa + wb).sum(axis=0, keepdims=True)             # colsum(Wg), f32
    bias = (beta.astype(jnp.float32) @ w32).reshape(1, NOUT)  # beta @ W, f32

    vmem_limit, tile_budget, target_tokens = _vmem_config()
    th = _pick_tile_rows(BH2, W2, K2, NOUT,
                         x.dtype.itemsize, x.dtype.itemsize,
                         jnp.dtype(cdt).itemsize,
                         target_tokens, tile_budget)
    grid = (pl.cdiv(BH2, th),)
    tile_rows = th * W2

    out = pl.pallas_call(
        _patch_merge_kernel,
        out_shape=jax.ShapeDtypeStruct((M, NOUT), x.dtype),
        grid_spec=pltpu.PrefetchScalarGridSpec(
            num_scalar_prefetch=0,
            grid=grid,
            in_specs=[
                # One contiguous row-pair block per grid step.
                pl.BlockSpec((th, 2, W2, K2), lambda i: (i, 0, 0, 0)),
                pl.BlockSpec((2, K2, NOUT), lambda i: (0, 0, 0)),   # Wg halves
                pl.BlockSpec((1, NOUT), lambda i: (0, 0)),          # colsum(Wg)
                pl.BlockSpec((1, NOUT), lambda i: (0, 0)),          # beta @ W
            ],
            out_specs=pl.BlockSpec((tile_rows, NOUT), lambda i: (i, 0)),
        ),
        compiler_params=pltpu.CompilerParams(
            dimension_semantics=("parallel",),
            vmem_limit_bytes=vmem_limit,
        ),
    )(x4, w_packed, wsum, bias)

    return out.reshape(B, H2 * W2, NOUT)


def reference_forward(x, H, W, gamma, beta, w):
    """Pure-JAX reference mirroring the PyTorch module."""
    B, L, C = x.shape
    xr = x.reshape(B, H, W, C)
    if (H % 2 == 1) or (W % 2 == 1):
        xr = jnp.pad(xr, ((0, 0), (0, H % 2), (0, W % 2), (0, 0)))
    x0 = xr[:, 0::2, 0::2, :]
    x1 = xr[:, 1::2, 0::2, :]
    x2 = xr[:, 0::2, 1::2, :]
    x3 = xr[:, 1::2, 1::2, :]
    xm = jnp.concatenate([x0, x1, x2, x3], axis=-1)
    xm = xm.reshape(B, -1, 4 * C).astype(jnp.float32)
    mean = jnp.mean(xm, axis=-1, keepdims=True)
    var = jnp.mean((xm - mean) ** 2, axis=-1, keepdims=True)
    xn = (xm - mean) * jax.lax.rsqrt(var + LN_EPS)
    xn = xn * gamma + beta
    return jnp.einsum("blk,kn->bln", xn, w).astype(x.dtype)


if __name__ == "__main__":
    key = jax.random.PRNGKey(0)

    def make_case(k, B, H, W, C):
        kx, kw, kg, kb = jax.random.split(k, 4)
        x = jax.random.normal(kx, (B, H * W, C), dtype=jnp.float32)
        # nn.Linear(4*dim, 2*dim, bias=False): torch weight is (2C, 4C); we
        # store the transposed (4C, 2C) so the kernel computes x @ W directly.
        w = jax.random.normal(kw, (4 * C, 2 * C), dtype=jnp.float32) * 0.02
        gamma = 1.0 + 0.1 * jax.random.normal(kg, (4 * C,), dtype=jnp.float32)
        beta = 0.1 * jax.random.normal(kb, (4 * C,), dtype=jnp.float32)
        return x, w, gamma, beta

    fwd = jax.jit(patch_merging_forward, static_argnums=(1, 2))

    cases = [(2, 16, 16, 32),   # even spatial dims
             (2, 7, 7, 16)]     # odd spatial dims -> exercises the pad path
    for B, H, W, C in cases:
        key, sub = jax.random.split(key)
        x, w, gamma, beta = make_case(sub, B, H, W, C)
        out = jax.block_until_ready(fwd(x, H, W, gamma, beta, w))
        ref = reference_forward(x, H, W, gamma, beta, w)
        H2, W2 = (H + 1) // 2, (W + 1) // 2
        assert out.shape == (B, H2 * W2, 2 * C), out.shape
        err = float(jnp.max(jnp.abs(out - ref)))
        assert jnp.allclose(out, ref, atol=1e-4, rtol=1e-4), err

    print("KERNEL_OK")
</pallas_src>

<mosaic_0001>
module attributes {stable_mosaic.version = 11 : i64} {
  func.func @_patch_merge_kernel(%arg0: i32, %arg1: memref<8x2x8x64xf32, #tpu.memory_space<vmem>>, %arg2: memref<2x64x64xf32, #tpu.memory_space<vmem>>, %arg3: memref<1x64xf32, #tpu.memory_space<vmem>>, %arg4: memref<1x64xf32, #tpu.memory_space<vmem>>, %arg5: memref<64x64xf32, #tpu.memory_space<vmem>>) attributes {dimension_semantics = [#tpu.dimension_semantics<parallel>], iteration_bounds = array<i64: 2>, scalar_prefetch = 0 : i64, scratch_operands = 0 : i64, tpu.core_type = #tpu.core_type<tc>, window_params = [{transform_indices = @transform_0, window_bounds = array<i64: 8, 2, 8, 64>}, {pipeline_mode = #tpu.pipeline_mode<synchronous>, transform_indices = @transform_1, window_bounds = array<i64: 2, 64, 64>}, {pipeline_mode = #tpu.pipeline_mode<synchronous>, transform_indices = @transform_2, window_bounds = array<i64: 1, 64>}, {pipeline_mode = #tpu.pipeline_mode<synchronous>, transform_indices = @transform_3, window_bounds = array<i64: 1, 64>}, {transform_indices = @transform_4, window_bounds = array<i64: 64, 64>}]} {
    %c0 = arith.constant 0 : index
    %c0_0 = arith.constant 0 : index
    %c0_1 = arith.constant 0 : index
    %c0_2 = arith.constant 0 : index
    %0 = vector.load %arg1[%c0, %c0_0, %c0_1, %c0_2] : memref<8x2x8x64xf32, #tpu.memory_space<vmem>>, vector<8x2x8x64xf32>
    %1 = vector.extract_strided_slice %0 {offsets = [0, 0, 0, 0], sizes = [8, 1, 8, 64], strides = [1, 1, 1, 1]} : vector<8x2x8x64xf32> to vector<8x1x8x64xf32>
    %2 = vector.shape_cast %1 : vector<8x1x8x64xf32> to vector<8x8x64xf32>
    %3 = vector.shape_cast %2 : vector<8x8x64xf32> to vector<64x64xf32>
    %4 = vector.extract_strided_slice %0 {offsets = [0, 1, 0, 0], sizes = [8, 1, 8, 64], strides = [1, 1, 1, 1]} : vector<8x2x8x64xf32> to vector<8x1x8x64xf32>
    %5 = vector.shape_cast %4 : vector<8x1x8x64xf32> to vector<8x8x64xf32>
    %6 = vector.shape_cast %5 : vector<8x8x64xf32> to vector<64x64xf32>
    %cst = arith.constant dense<0.000000e+00> : vector<64xf32>
    %7 = vector.multi_reduction <add>, %3, %cst [1] : vector<64x64xf32> to vector<64xf32>
    %8 = vector.shape_cast %7 : vector<64xf32> to vector<64x1xf32>
    %cst_3 = arith.constant dense<0.000000e+00> : vector<64xf32>
    %9 = vector.multi_reduction <add>, %6, %cst_3 [1] : vector<64x64xf32> to vector<64xf32>
    %10 = vector.shape_cast %9 : vector<64xf32> to vector<64x1xf32>
    %11 = arith.addf %8, %10 : vector<64x1xf32>
    %12 = arith.mulf %3, %3 : vector<64x64xf32>
    %cst_4 = arith.constant dense<0.000000e+00> : vector<64xf32>
    %13 = vector.multi_reduction <add>, %12, %cst_4 [1] : vector<64x64xf32> to vector<64xf32>
    %14 = vector.shape_cast %13 : vector<64xf32> to vector<64x1xf32>
    %15 = arith.mulf %6, %6 : vector<64x64xf32>
    %cst_5 = arith.constant dense<0.000000e+00> : vector<64xf32>
    %16 = vector.multi_reduction <add>, %15, %cst_5 [1] : vector<64x64xf32> to vector<64xf32>
    %17 = vector.shape_cast %16 : vector<64xf32> to vector<64x1xf32>
    %18 = arith.addf %14, %17 : vector<64x1xf32>
    %cst_6 = arith.constant 7.812500e-03 : f32
    %19 = vector.broadcast %cst_6 : f32 to vector<64x1xf32>
    %20 = arith.mulf %11, %19 : vector<64x1xf32>
    %cst_7 = arith.constant 7.812500e-03 : f32
    %21 = vector.broadcast %cst_7 : f32 to vector<64x1xf32>
    %22 = arith.mulf %18, %21 : vector<64x1xf32>
    %23 = arith.mulf %20, %20 : vector<64x1xf32>
    %24 = arith.subf %22, %23 : vector<64x1xf32>
    %cst_8 = arith.constant 0.000000e+00 : f32
    %25 = vector.broadcast %cst_8 : f32 to vector<64x1xf32>
    %26 = arith.maximumf %24, %25 : vector<64x1xf32>
    %cst_9 = arith.constant 9.99999974E-6 : f32
    %27 = vector.broadcast %cst_9 : f32 to vector<64x1xf32>
    %28 = arith.addf %26, %27 : vector<64x1xf32>
    %29 = math.rsqrt %28 : vector<64x1xf32>
    %c0_10 = arith.constant 0 : index
    %c0_11 = arith.constant 0 : index
    %c0_12 = arith.constant 0 : index
    %30 = vector.load %arg2[%c0_10, %c0_11, %c0_12] : memref<2x64x64xf32, #tpu.memory_space<vmem>>, vector<1x64x64xf32>
    %31 = vector.shape_cast %30 : vector<1x64x64xf32> to vector<64x64xf32>
    %cst_13 = arith.constant dense<0.000000e+00> : vector<64x64xf32>
    %32 = tpu.matmul %3, %31, %cst_13 {dimension_numbers = #tpu.dot_dimension_numbers<[1], [0], [0], [1], [0, 0, 1, 1], [], []>} : vector<64x64xf32>, vector<64x64xf32>, vector<64x64xf32> -> vector<64x64xf32>
    %c1 = arith.constant 1 : index
    %c0_14 = arith.constant 0 : index
    %c0_15 = arith.constant 0 : index
    %33 = vector.load %arg2[%c1, %c0_14, %c0_15] : memref<2x64x64xf32, #tpu.memory_space<vmem>>, vector<1x64x64xf32>
    %34 = vector.shape_cast %33 : vector<1x64x64xf32> to vector<64x64xf32>
    %cst_16 = arith.constant dense<0.000000e+00> : vector<64x64xf32>
    %35 = tpu.matmul %6, %34, %cst_16 {dimension_numbers = #tpu.dot_dimension_numbers<[1], [0], [0], [1], [0, 0, 1, 1], [], []>} : vector<64x64xf32>, vector<64x64xf32>, vector<64x64xf32> -> vector<64x64xf32>
    %36 = arith.addf %32, %35 : vector<64x64xf32>
    %c0_17 = arith.constant 0 : index
    %c0_18 = arith.constant 0 : index
    %37 = vector.load %arg3[%c0_17, %c0_18] : memref<1x64xf32, #tpu.memory_space<vmem>>, vector<1x64xf32>
    %38 = vector.broadcast %20 : vector<64x1xf32> to vector<64x64xf32>
    %39 = vector.broadcast %37 : vector<1x64xf32> to vector<64x64xf32>
    %40 = arith.mulf %38, %39 : vector<64x64xf32>
    %41 = arith.subf %36, %40 : vector<64x64xf32>
    %42 = vector.broadcast %29 : vector<64x1xf32> to vector<64x64xf32>
    %43 = arith.mulf %42, %41 : vector<64x64xf32>
    %c0_19 = arith.constant 0 : index
    %c0_20 = arith.constant 0 : index
    %44 = vector.load %arg4[%c0_19, %c0_20] : memref<1x64xf32, #tpu.memory_space<vmem>>, vector<1x64xf32>
    %45 = vector.broadcast %44 : vector<1x64xf32> to vector<64x64xf32>
    %46 = arith.addf %43, %45 : vector<64x64xf32>
    %c0_21 = arith.constant 0 : index
    %c0_22 = arith.constant 0 : index
    %47 = vector.load %arg5[%c0_21, %c0_22] : memref<64x64xf32, #tpu.memory_space<vmem>>, vector<64x64xf32>
    tpu.vector_store %arg5[%c0_21, %c0_22], %46 {strides = array<i32>} : memref<64x64xf32, #tpu.memory_space<vmem>>, vector<64x64xf32>,
    return
  }
  func.func @transform_0(%arg0: i32) -> (i32, i32, i32, i32) {
    %c0_i32 = arith.constant 0 : i32
    %c0_i32_0 = arith.constant 0 : i32
    %c0_i32_1 = arith.constant 0 : i32
    %c0_i32_2 = arith.constant 0 : i32
    return %arg0, %c0_i32, %c0_i32_0, %c0_i32_1 : i32, i32, i32, i32
  }
  func.func @transform_1(%arg0: i32) -> (i32, i32, i32) {
    %c0_i32 = arith.constant 0 : i32
    %c0_i32_0 = arith.constant 0 : i32
    %c0_i32_1 = arith.constant 0 : i32
    %c0_i32_2 = arith.constant 0 : i32
    return %c0_i32, %c0_i32_0, %c0_i32_1 : i32, i32, i32
  }
  func.func @transform_2(%arg0: i32) -> (i32, i32) {
    %c0_i32 = arith.constant 0 : i32
    %c0_i32_0 = arith.constant 0 : i32
    %c0_i32_1 = arith.constant 0 : i32
    return %c0_i32, %c0_i32_0 : i32, i32
  }
  func.func @transform_3(%arg0: i32) -> (i32, i32) {
    %c0_i32 = arith.constant 0 : i32
    %c0_i32_0 = arith.constant 0 : i32
    %c0_i32_1 = arith.constant 0 : i32
    return %c0_i32, %c0_i32_0 : i32, i32
  }
  func.func @transform_4(%arg0: i32) -> (i32, i32) {
    %c0_i32 = arith.constant 0 : i32
    %c0_i32_0 = arith.constant 0 : i32
    return %arg0, %c0_i32 : i32, i32
  }
}

</mosaic_0001>

<bundles_post_ra>
// kernel: mul.5
= control target key start
LH: loop header
LB: loop body
LE: loop exit
PB: predicated region body
PF: predicated region fallthrough
CT: control target
= control target key end

     0   :  { %s40_s8 = smov 32   ;;  %vm8_vm0 = vcmask 261120   ;;  %s41_s9 = smov 64   ;;  %s58_s0 = inlined_call_operand.vmem [shape: f32[128], index: 0, kind: input, shape index: {}]   ;;  %s59_s1 = inlined_call_operand.vmem [shape: f32[4,32], index: 1, kind: output, shape index: {}]  }
   0x1   :  { %v5_v0 = vld [vmem:[%s58_s0] sm:$0x1]  ;;  %s39_s0 = smov 96  }
   0x2   :  { %6 = vst [vmem:[#allocation1] sm:$0x1] %v5_v0 }
   0x9   :  { %v10_v1 = vld [vmem:[#allocation1] sm:$0x1]  }
   0xa   :  { %v22_v2 = vld [vmem:[#allocation1] sm:$0x1]   ;;  %11 = vrot.lane.b32.xlu0 %v10_v1, %s39_s0 }
   0xb   :  { %23 = vrot.lane.b32.xlu1 %v22_v2, %s40_s8  ;;  %v7_v3 = vld [vmem:[#allocation1] sm:$0x1]  }
   0xc   :  { %v16_v4 = vld [vmem:[#allocation1] sm:$0x1]   ;;  %9 = vst.msk [vmem:[#allocation0] sm:$0x1] %vm8_vm0, %v7_v3  }
   0xe   :  { %17 = vrot.lane.b32.xlu0 %v16_v4, %s41_s9 }
  0x7c   :  { %v12_v5 = vpop.permute.xlu0 %11  }
  0x7d   :  { %v24_v6 = vpop.permute.xlu1 %23   ;;  %15 = vst.msk [vmem:[#allocation0 + $0x1] sm:$0x1] %vm8_vm0, %v12_v5  }
  0x7e   :  { %27 = vst.msk [vmem:[#allocation0 + $0x3] sm:$0x1] %vm8_vm0, %v24_v6  }
  0x80   :  { %v18_v7 = vpop.permute.xlu0 %17  }
  0x81   :  { %21 = vst.msk [vmem:[#allocation0 + $0x2] sm:$0x1] %vm8_vm0, %v18_v7  }
  0x88   :  { %v32_v8 = vld [vmem:[#allocation0] sm:$0xf] }
  0x89   :  { %35 = vst [vmem:[%s59_s1] sm:$0xf] %v32_v8 }

// kernel: patch_merging_forward.1
= control target key start
LH: loop header
LB: loop body
LE: loop exit
PB: predicated region body
PF: predicated region fallthrough
CT: control target
= control target key end

     0   :  { %9 = vsyncpa [#allocation3], 0  ;;  %s1450_s0 = inlined_call_operand.vmem [shape: f32[16,2,8,64], index: 0, kind: input, shape index: {}]   ;;  %s1451_s1 = inlined_call_operand.vmem [shape: f32[2,64,64], index: 1, kind: input, shape index: {}]   ;;  %s1452_s2 = inlined_call_operand.vmem [shape: f32[1,64], index: 2, kind: input, shape index: {}]   ;;  %s1453_s3 = inlined_call_operand.vmem [shape: f32[1,64], index: 3, kind: input, shape index: {}]   ;;  %s1454_s4 = inlined_call_operand.hbm [shape: f32[128,64], index: 4, kind: output, shape index: {}]  }
   0x1   :  { %11 = vsyncpa [#allocation3 + $0x1], 0  ;;  %s1084_s15 = smov 0   ;;  %s1086_s16 = smov 0  }
   0x2   :  { %s1088_s17 = smov 0   ;;  %s1090_s18 = smov 0  }
   0x3 LB: > { %s1105_s19 = sadd.s32 4294967295, %s1054_s18   ;;  %s808_s20 = sadd.s32 4294967294, %s1054_s18   ;;  %s1054_s18 = sphi %s1090_s18, %s1460_s18   ;;  %s1050_s17 = sphi %s1088_s17, %s1459_s17   ;;  %s1046_s16 = sphi %s1086_s16, %s1458_s16   ;;  %s1042_s15 = sphi %s1084_s15, %s1457_s15  }
   0x4   : > { %s1109_s21 = sadd.s32 1, %s1054_s18   ;;  %s113_s22 = sadd.s32 1, %s1050_s17 }
   0x5   : > { %s110_s23 = ssub.s32 %s1054_s18, %s1109_s21  ;;  %p123_p0 = scmp.ne.s32.totalorder %s1050_s17, %s1046_s16 }
   0x6   : > { %p111_p1 = scmp.eq.s32.totalorder %s110_s23, 0  ;;  %p124_p2 = scmp.eq.s32.totalorder %s1105_s19, 1 }
   0x7   : > { %p129_p3 = scmp.ne.s32.totalorder %s1046_s16, %s1042_s15  ;;  %p130_p4 = scmp.eq.s32.totalorder %s808_s20, 1 }
   0x8   : > { %s1120_s24 = scalar_select %p111_p1, %s1050_s17, %s113_s22  }
   0x9   : > { %p1122_p5 = por %p124_p2, %p123_p0  ;;  %p1126_p6 = por %p130_p4, %p129_p3 }
   0xa   : > { %p811_p7 = scmp.ge.s32.totalorder %s1054_s18, 1  ;;  %p167_p8 = scmp.lt.s32.totalorder %s1054_s18, 3 }
   0xc   : > { %p168_p9 = pnand %p811_p7, %p167_p8 }
   0xd   : > { %s813_s7 = sshll.u32 (!%p168_p9), %s1105_s19, 3  ;;  %s191_s6 = sand.u32 (!%p168_p9), 1, %s1046_s16  }
   0xe   : > { %171 = sbr.rel (%p168_p9) target bundleno = 273 (0x111), region = 36  ;;  %p195_p10 = scmp.lt.s32.totalorder (!%p168_p9), %s813_s7, 15 }
   0xf   : > { %s812_s8 = sshll.u32 (!%p168_p9), %s191_s6, 6  ;;  %s848_s11 = sshll.u32 (!%p168_p9), %s1105_s19, 10 }
  0x10   : > { %s1375_s10 = scalar_lea.vmem (!%p168_p9), [#allocation2], %s812_s8  ;;  %s1400_s20 = scalar_lea.hbm (!%p168_p9), %s1454_s4, %s848_s11 }
  0x11   : > { %s746_s12 = sshll.u32 (!%p168_p9), %s1375_s10, 4  ;;  %s1410_s19 = scalar_lea.sflag (!%p168_p9), [#allocation3], %s191_s6  ;;  %s1402_s12 = int_to_ptr.vmem [resolvable:$true] %s746_s12 }
  0x12   : > { %s994_s22 = scalar_lea.vmem (!%p168_p9), %s1402_s12, 1024  ;;  %s1056_s23 = smov (!%p168_p9), [#allocation2]  }
  0x13   : > { %v823_v0 = vld [vmem:[%s1451_s1 + $0x78] sm:$0xff]  ;;  %v822_v2 = vld [vmem:[%s1451_s1 + $0x70] sm:$0xff]  ;;  %v821_v4 = vld [vmem:[%s1451_s1 + $0x68] sm:$0xff]  ;;  %s1462_s7 = smov (!%p195_p10, %s813_s7), 15  ;;  %vm218_vm0 = vcmask 523264   ;;  %p995_p11 = scmp.ne.s32.totalorder %s1402_s12, %s994_s22 }
  0x14   : > { %v410_v1 = vld [vmem:[%s1451_s1 + $0x38] sm:$0xff]  ;;  %881 = vmatprep.subr.mxu0 %v823_v0  ;;  %v409_v3 = vld [vmem:[%s1451_s1 + $0x30] sm:$0xff]  ;;  %v408_v5 = vld [vmem:[%s1451_s1 + $0x28] sm:$0xff]  ;;  %s847_s27 = sshll.u32 %s1462_s7, 4 }
  0x15   : > { %909 = vmatprep.subr.mxu1 %v410_v1  ;;  %882 = vmatpush3.msra.mxu0 %v823_v0  ;;  %v820_v6 = vld [vmem:[%s1451_s1 + $0x60] sm:$0xff]  ;;  %v819_v8 = vld [vmem:[%s1451_s1 + $0x58] sm:$0xff]  ;;  %s1166_s9 = scalar_lea.vmem %s1450_s0, %s847_s27  ;;  %v818_v14 = vld [vmem:[%s1451_s1 + $0x50] sm:$0xff]  ;;  %p996_p12 = pnand %p995_p11, %p1122_p5 }
  0x16   : > { %910 = vmatpush3.msra.mxu1 %v410_v1  ;;  %883 = vmatprep.subr.mxu0 %v822_v2  ;;  %v407_v7 = vld [vmem:[%s1451_s1 + $0x20] sm:$0xff]  ;;  %v406_v9 = vld [vmem:[%s1451_s1 + $0x18] sm:$0xff]  ;;  %v405_v15 = vld [vmem:[%s1451_s1 + $0x10] sm:$0xff]  ;;  %s998_s27 = sshll.u32 %s1056_s23, 4  ;;  %s999_s27 = int_to_ptr.vmem [resolvable:$false] %s998_s27 }
  0x17   : > { %911 = vmatprep.subr.mxu1 %v409_v3  ;;  %884 = vmatpush3.msra.mxu0 %v822_v2  ;;  %v1169_v10 = vld [vmem:[%s1166_s9 + $0x20] sm:$0xff]  ;;  %v1185_v16 = vld [vmem:[%s1166_s9 + $0x30] sm:$0xff]  ;;  %v817_v18 = vld [vmem:[%s1451_s1 + $0x48] sm:$0xff]  ;;  %p997_p13 = pneg %p996_p12  ;;  %s1000_s28 = scalar_lea.vmem %s999_s27, 2048 }
  0x18   : > { %912 = vmatpush3.msra.mxu1 %v409_v3  ;;  %885 = vmatprep.subr.mxu0 %v821_v4  ;;  %v1172_v11 = vld [vmem:[%s1166_s9] sm:$0xff]  ;;  %v225_v12 = vsel %vm218_vm0, %v1169_v10, 0.0  ;;  %v1188_v17 = vld [vmem:[%s1166_s9 + $0x10] sm:$0xff]  ;;  %v404_v19 = vld [vmem:[%s1451_s1 + $0x8] sm:$0xff]  ;;  %v228_v20 = vsel %vm218_vm0, %v1185_v16, 0.0  ;;  %v278_v51 = vmul.f32 %v1185_v16, %v1185_v16  ;;  %v277_v53 = vmul.f32 %v1169_v10, %v1169_v10  ;;  %p1001_p0 = scmp.lt.s32.totalorder %s1402_s12, %s999_s27  ;;  %p1002_p1 = scmp.lt.s32.totalorder %s1000_s28, %s994_s22 }
  0x19   : > { %913 = vmatprep.subr.mxu1 %v408_v5  ;;  %886 = vmatpush3.msra.mxu0 %v821_v4  ;;  %v219_v13 = vsel %vm218_vm0, %v1172_v11, 0.0  ;;  %v222_v21 = vsel %vm218_vm0, %v1188_v17, 0.0  ;;  %v816_v22 = vld [vmem:[%s1451_s1 + $0x40] sm:$0xff]  ;;  %v1207_v24 = vld [vmem:[%s1166_s9 + $0x50] sm:$0xff]  ;;  %v1210_v25 = vld [vmem:[%s1166_s9 + $0x8] sm:$0xff]  ;;  %v276_v47 = vmul.f32 %v1188_v17, %v1188_v17  ;;  %v275_v49 = vmul.f32 %v1172_v11, %v1172_v11 }
  0x1a   : > { %914 = vmatpush3.msra.mxu1 %v408_v5  ;;  %887 = vmatprep.subr.mxu0 %v820_v6  ;;  %v403_v23 = vld [vmem:[%s1451_s1] sm:$0xff]  ;;  %v234_v27 = vsel %vm218_vm0, %v1207_v24, 0.0  ;;  %v1218_v28 = vld [vmem:[%s1166_s9 + $0x18] sm:$0xff]  ;;  %v216_v30 = vld [vmem:[%s1166_s9 + $0x70] sm:$0xff]  ;;  %v243_v39 = vsel %vm218_vm0, %v1210_v25, 0.0  ;;  %v292_v54 = vsel %vm218_vm0, %v278_v51, 0.0  ;;  %v280_v55 = vmul.f32 %v1207_v24, %v1207_v24  ;;  %p1003_p2 = por %p1002_p1, %p1001_p0 }
  0x1b   : > { %915 = vmatprep.subr.mxu1 %v407_v7  ;;  %888 = vmatpush3.msra.mxu0 %v820_v6  ;;  %v1213_v26 = vld [vmem:[%s1166_s9 + $0x40] sm:$0xff]  ;;  %v1228_v31 = vld [vmem:[%s1166_s9 + $0x28] sm:$0xff]  ;;  %v240_v33 = vsel %vm218_vm0, %v216_v30, 0.0  ;;  %v1237_v34 = vld [vmem:[%s1166_s9 + $0x38] sm:$0xff]  ;;  %v246_v37 = vsel %vm218_vm0, %v1218_v28, 0.0  ;;  %v286_v50 = vsel %vm218_vm0, %v276_v47, 0.0  ;;  %v282_v59 = vmul.f32 %v216_v30, %v216_v30 }
  0x1c   : > { %916 = vmatpush3.msra.mxu1 %v407_v7  ;;  %889 = vmatprep.subr.mxu0 %v819_v8  ;;  %v231_v29 = vsel %vm218_vm0, %v1213_v26, 0.0  ;;  %v214_v32 = vld [vmem:[%s1166_s9 + $0x60] sm:$0xff]  ;;  %v1245_v36 = vld [vmem:[%s1166_s9 + $0x48] sm:$0xff]  ;;  %v213_v38 = vld [vmem:[%s1166_s9 + $0x58] sm:$0xff]  ;;  %v252_v41 = vsel %vm218_vm0, %v1237_v34, 0.0  ;;  %v249_v43 = vsel %vm218_vm0, %v1228_v31, 0.0  ;;  %v279_v57 = vmul.f32 %v1213_v26, %v1213_v26  ;;  %p1004_p3 = pnand %p1003_p2, %p997_p13 }
  0x1d   : > { %917 = vmatprep.subr.mxu1 %v406_v9  ;;  %226 = vadd.xlane.f32.xlu1 %v225_v12  ;;  %v237_v35 = vsel %vm218_vm0, %v214_v32, 0.0  ;;  %v1261_v40 = vld [vmem:[%s1166_s9 + $0x68] sm:$0xff]  ;;  %v217_v42 = vld [vmem:[%s1166_s9 + $0x78] sm:$0xff]  ;;  %v258_v44 = vsel %vm218_vm0, %v213_v38, 0.0  ;;  %v255_v45 = vsel %vm218_vm0, %v1245_v36, 0.0  ;;  %v283_v52 = vsel %vm218_vm0, %v275_v49, 0.0 }
  0x1e   : > { %220 = vadd.xlane.f32.xlu0 %v219_v13  ;;  %890 = vmatpush3.msra.mxu0 %v819_v8  ;;  %v264_v46 = vsel %vm218_vm0, %v217_v42, 0.0  ;;  %v261_v48 = vsel %vm218_vm0, %v1261_v40, 0.0  ;;  %v289_v56 = vsel %vm218_vm0, %v277_v53, 0.0  ;;  %v298_v58 = vsel %vm218_vm0, %v280_v55, 0.0 }
  0x1f   : > { %918 = vmatpush3.msra.mxu1 %v406_v9  ;;  %891 = vmatprep.subr.mxu0 %v818_v14  ;;  %v295_v60 = vsel %vm218_vm0, %v279_v57, 0.0  ;;  %v281_v61 = vmul.f32 %v214_v32, %v214_v32  ;;  %v304_v62 = vsel %vm218_vm0, %v282_v59, 0.0  ;;  %v308_v63 = vmul.f32 %v1218_v28, %v1218_v28 }
  0x20   : > { %919 = vmatprep.subr.mxu1 %v405_v15  ;;  %892 = vmatpush3.msra.mxu0 %v818_v14  ;;  %v307_v1 = vmul.f32 %v1210_v25, %v1210_v25  ;;  %v310_v3 = vmul.f32 %v1237_v34, %v1237_v34  ;;  %v309_v5 = vmul.f32 %v1228_v31, %v1228_v31 }
  0x21   : > { %920 = vmatpush3.msra.mxu1 %v405_v15  ;;  %893 = vmatprep.subr.mxu0 %v817_v18  ;;  %v301_v0 = vsel %vm218_vm0, %v281_v61, 0.0  ;;  %v318_v2 = vsel %vm218_vm0, %v308_v63, 0.0  ;;  %v312_v7 = vmul.f32 %v213_v38, %v213_v38  ;;  %v311_v9 = vmul.f32 %v1245_v36, %v1245_v36 }
  0x22   : > { %921 = vmatprep.subr.mxu1 %v404_v19  ;;  %229 = vadd.xlane.f32.xlu1 %v228_v20  ;;  %v315_v4 = vsel %vm218_vm0, %v307_v1, 0.0  ;;  %v324_v6 = vsel %vm218_vm0, %v310_v3, 0.0  ;;  %v321_v8 = vsel %vm218_vm0, %v309_v5, 0.0  ;;  %v313_v13 = vmul.f32 %v1261_v40, %v1261_v40 }
  0x23   : > { %223 = vadd.xlane.f32.xlu0 %v222_v21  ;;  %894 = vmatpush3.msra.mxu0 %v817_v18  ;;  %v327_v12 = vsel %vm218_vm0, %v311_v9, 0.0 }
  0x24   : > { %922 = vmatpush3.msra.mxu1 %v404_v19  ;;  %895 = vmatprep.subr.mxu0 %v816_v22  ;;  %v333_v15 = vsel %vm218_vm0, %v313_v13, 0.0 }
  0x25   : > { %923 = vmatprep.subr.mxu1 %v403_v23  ;;  %896 = vmatpush3.msra.mxu0 %v816_v22 }
  0x26   : > { %897 = vmatprep.mubr.msk.f32.mxu0 %vm218_vm0, %v1210_v25  ;;  %924 = vmatpush3.msra.mxu1 %v403_v23 }
  0x27   : > { %925 = vmatprep.mubr.msk.f32.mxu1 %vm218_vm0, %v1172_v11  ;;  %235 = vadd.xlane.f32.xlu1 %v234_v27  ;;  %v314_v11 = vmul.f32 %v217_v42, %v217_v42 }
  0x28   : > { %898 = vmatmul.mubr.msk.f32.vlgmr.msra.gmra.mxu0 %vm218_vm0, %v1218_v28  ;;  %926 = vmatmul.mubr.msk.f32.vlgmr.msra.gmra.mxu1 %vm218_vm0, %v1188_v17 }
  0x29   : > { %232 = vadd.xlane.f32.xlu0 %v231_v29  ;;  %900 = vmatprep.mubr.msk.f32.mxu0 %vm218_vm0, %v1228_v31  ;;  %v336_v14 = vsel %vm218_vm0, %v314_v11, 0.0 }
  0x2a   : > { %928 = vmatprep.mubr.msk.f32.mxu1 %vm218_vm0, %v1169_v10  ;;  %v330_v10 = vsel %vm218_vm0, %v312_v7, 0.0 }
  0x2b   : > { %241 = vadd.xlane.f32.xlu1 %v240_v33 }
  0x2c   : > { %901 = vmatmul.mubr.msk.f32.gmra.mxu0 %vm218_vm0, %v1237_v34  ;;  %929 = vmatmul.mubr.msk.f32.gmra.mxu1 %vm218_vm0, %v1185_v16 }
  0x2d   : > { %238 = vadd.xlane.f32.xlu0 %v237_v35  ;;  %903 = vmatprep.mubr.msk.f32.mxu0 %vm218_vm0, %v1245_v36 }
  0x2e   : > { %931 = vmatprep.mubr.msk.f32.mxu1 %vm218_vm0, %v1213_v26 }
  0x2f   : > { %247 = vadd.xlane.f32.xlu1 %v246_v37 }
  0x30   : > { %904 = vmatmul.mubr.msk.f32.gmra.mxu0 %vm218_vm0, %v213_v38  ;;  %932 = vmatmul.mubr.msk.f32.gmra.mxu1 %vm218_vm0, %v1207_v24 }
  0x31   : > { %244 = vadd.xlane.f32.xlu0 %v243_v39  ;;  %906 = vmatprep.mubr.msk.f32.mxu0 %vm218_vm0, %v1261_v40 }
  0x32   : > { %934 = vmatprep.mubr.msk.f32.mxu1 %vm218_vm0, %v214_v32 }
  0x33   : > { %253 = vadd.xlane.f32.xlu1 %v252_v41 }
  0x34   : > { %907 = vmatmul.mubr.msk.f32.gmra.mxu0 %vm218_vm0, %v217_v42  ;;  %935 = vmatmul.mubr.msk.f32.gmra.mxu1 %vm218_vm0, %v216_v30 }
  0x35   : > { %250 = vadd.xlane.f32.xlu0 %v249_v43 }
  0x37   : > { %259 = vadd.xlane.f32.xlu1 %v258_v44 }
  0x39   : > { %256 = vadd.xlane.f32.xlu0 %v255_v45 }
  0x3b   : > { %265 = vadd.xlane.f32.xlu1 %v264_v46 }
  0x3d   : > { %262 = vadd.xlane.f32.xlu0 %v261_v48 }
  0x3f   : > { %287 = vadd.xlane.f32.xlu1 %v286_v50 }
  0x41   : > { %284 = vadd.xlane.f32.xlu0 %v283_v52 }
  0x43   : > { %293 = vadd.xlane.f32.xlu1 %v292_v54 }
  0x45   : > { %290 = vadd.xlane.f32.xlu0 %v289_v56 }
  0x47   : > { %299 = vadd.xlane.f32.xlu1 %v298_v58 }
  0x49   : > { %296 = vadd.xlane.f32.xlu0 %v295_v60 }
  0x4b   : > { %305 = vadd.xlane.f32.xlu1 %v304_v62 }
  0x4d   : > { %302 = vadd.xlane.f32.xlu0 %v301_v0 }
  0x4f   : > { %319 = vadd.xlane.f32.xlu1 %v318_v2 }
  0x51   : > { %316 = vadd.xlane.f32.xlu0 %v315_v4 }
  0x53   : > { %325 = vadd.xlane.f32.xlu1 %v324_v6 }
  0x55   : > { %322 = vadd.xlane.f32.xlu0 %v321_v8 }
  0x57   : > { %331 = vadd.xlane.f32.xlu1 %v330_v10 }
  0x59   : > { %328 = vadd.xlane.f32.xlu0 %v327_v12 }
  0x5b   : > { %337 = vadd.xlane.f32.xlu1 %v336_v14 }
  0x5d   : > { %334 = vadd.xlane.f32.xlu0 %v333_v15 }
  0xa6   : > { %v227_v16 = vpop.xlane.xlu1 %226 }
  0xa7   : > { %v221_v17 = vpop.xlane.xlu0 %220 }
  0xab   : > { %v230_v18 = vpop.xlane.xlu1 %229 }
  0xac   : > { %v224_v19 = vpop.xlane.xlu0 %223 }
  0xb0   : > { %v236_v20 = vpop.xlane.xlu1 %235 }
  0xb2   : > { %v233_v21 = vpop.xlane.xlu0 %232 }
  0xb4   : > { %v242_v22 = vpop.xlane.xlu1 %241 }
  0xb6   : > { %v239_v23 = vpop.xlane.xlu0 %238 }
  0xb8   : > { %v248_v24 = vpop.xlane.xlu1 %247 }
  0xb9   : > { %v268_v38 = vadd.f32 %v248_v24, %v224_v19 }
  0xba   : > { %v245_v25 = vpop.xlane.xlu0 %244 }
  0xbb   : > { %v267_v39 = vadd.f32 %v245_v25, %v221_v17  ;;  %v1322_v42 = vmul.f32 0.0078125, %v268_v38 }
  0xbc   : > { %v254_v26 = vpop.xlane.xlu1 %253 }
  0xbd   : > { %v270_v43 = vadd.f32 %v254_v26, %v230_v18  ;;  %v1324_v44 = vmul.f32 0.0078125, %v267_v39  ;;  %v364_v52 = vmul.f32 %v1322_v42, %v1322_v42 }
  0xbe   : > { %v251_v27 = vpop.xlane.xlu0 %250 }
  0xbf   : > { %v269_v45 = vadd.f32 %v251_v27, %v227_v16  ;;  %v1328_v53 = vmul.f32 0.0078125, %v270_v43  ;;  %v363_v55 = vmul.f32 %v1324_v44, %v1324_v44 }
  0xc0   : > { %v260_v28 = vpop.xlane.xlu1 %259 }
  0xc1   : > { %v272_v47 = vadd.f32 %v260_v28, %v236_v20  ;;  %v1332_v56 = vmul.f32 0.0078125, %v269_v45  ;;  %v366_v2 = vmul.f32 %v1328_v53, %v1328_v53 }
  0xc2   : > { %v257_v29 = vpop.xlane.xlu0 %256 }
  0xc3   : > { %v271_v50 = vadd.f32 %v257_v29, %v233_v21  ;;  %v1334_v59 = vmul.f32 0.0078125, %v272_v47  ;;  %v365_v6 = vmul.f32 %v1332_v56, %v1332_v56 }
  0xc4   : > { %v266_v30 = vpop.xlane.xlu1 %265 }
  0xc5   : > { %v1336_v63 = vmul.f32 0.0078125, %v271_v50  ;;  %v274_v3 = vadd.f32 %v266_v30, %v242_v22  ;;  %v368_v11 = vmul.f32 %v1334_v59, %v1334_v59 }
  0xc6   : > { %v263_v31 = vpop.xlane.xlu0 %262 }
  0xc7   : > { %v273_v7 = vadd.f32 %v263_v31, %v239_v23  ;;  %v367_v16 = vmul.f32 %v1336_v63, %v1336_v63  ;;  %v1346_v20 = vmul.f32 0.0078125, %v274_v3 }
  0xc8   : > { %v288_v32 = vpop.xlane.xlu1 %287 }
  0xc9   : > { %v1348_v23 = vmul.f32 0.0078125, %v273_v7  ;;  %v841_v7 = vld [vmem:[%s1453_s3] ss:$0 sm:$0xff] }
  0xca   : > { %v285_v33 = vpop.xlane.xlu0 %284 }
  0xcb   : > { %v369_v38 = vmul.f32 %v1348_v23, %v1348_v23 }
  0xcc   : > { %v294_v34 = vpop.xlane.xlu1 %293 }
  0xce   : > { %v291_v35 = vpop.xlane.xlu0 %290 }
  0xd0   : > { %v300_v36 = vpop.xlane.xlu1 %299 }
  0xd2   : > { %v297_v37 = vpop.xlane.xlu0 %296 }
  0xd4   : > { %v306_v40 = vpop.xlane.xlu1 %305 }
  0xd6   : > { %v303_v41 = vpop.xlane.xlu0 %302 }
  0xd8   : > { %v320_v46 = vpop.xlane.xlu1 %319 }
  0xd9   : > { %v340_v48 = vadd.f32 %v320_v46, %v288_v32 }
  0xda   : > { %v317_v49 = vpop.xlane.xlu0 %316 }
  0xdb   : > { %v339_v51 = vadd.f32 %v317_v49, %v285_v33  ;;  %v356_v54 = vmul.f32 0.0078125, %v340_v48 }
  0xdc   : > { %v326_v58 = vpop.xlane.xlu1 %325 }
  0xdd   : > { %v355_v57 = vmul.f32 0.0078125, %v339_v51  ;;  %v372_v60 = vsub.f32 %v356_v54, %v364_v52  ;;  %v342_v61 = vadd.f32 %v326_v58, %v294_v34  ;;  %v370_v34 = vmul.f32 %v1346_v20, %v1346_v20 }
  0xde   : > { %v323_v62 = vpop.xlane.xlu0 %322 }
  0xdf   : > { %v371_v0 = vsub.f32 %v355_v57, %v363_v55  ;;  %v341_v1 = vadd.f32 %v323_v62, %v291_v35  ;;  %v380_v4 = vmax.f32 %v372_v60, 0.0  ;;  %v358_v5 = vmul.f32 0.0078125, %v342_v61 }
  0xe0   : > { %v332_v10 = vpop.xlane.xlu1 %331 }
  0xe1   : > { %v379_v8 = vmax.f32 %v371_v0, 0.0  ;;  %v357_v9 = vmul.f32 0.0078125, %v341_v1  ;;  %v388_v12 = vadd.f32 1e-05, %v380_v4  ;;  %v374_v13 = vsub.f32 %v358_v5, %v366_v2 }
  0xe2   : > { %v344_v14 = vadd.f32 %v332_v10, %v300_v36  ;;  %v329_v15 = vpop.xlane.xlu0 %328 }
  0xe3   : > { %v387_v17 = vadd.f32 1e-05, %v379_v8  ;;  %v373_v18 = vsub.f32 %v357_v9, %v365_v6  ;;  %v343_v19 = vadd.f32 %v329_v15, %v297_v37  ;;  %978 = vrsqrt.f32 %v388_v12 }
  0xe4   : > { %v382_v21 = vmax.f32 %v374_v13, 0.0  ;;  %v360_v22 = vmul.f32 0.0078125, %v344_v14  ;;  %v338_v26 = vpop.xlane.xlu1 %337 }
  0xe5   : > { %980 = vrsqrt.f32 %v387_v17  ;;  %v381_v24 = vmax.f32 %v373_v18, 0.0  ;;  %v359_v25 = vmul.f32 0.0078125, %v343_v19  ;;  %v346_v29 = vadd.f32 %v338_v26, %v306_v40 }
  0xe6   : > { %v390_v27 = vadd.f32 1e-05, %v382_v21  ;;  %v376_v28 = vsub.f32 %v360_v22, %v368_v11  ;;  %v335_v30 = vpop.xlane.xlu0 %334 }
  0xe7   : > { %v389_v31 = vadd.f32 1e-05, %v381_v24  ;;  %v375_v32 = vsub.f32 %v359_v25, %v367_v16  ;;  %v345_v33 = vadd.f32 %v335_v30, %v303_v41  ;;  %v362_v36 = vmul.f32 0.0078125, %v346_v29  ;;  %v1357_v41 = vld [vmem:[%s1452_s2] ss:$0 sm:$0xff] }
  0xe8   : > { %982 = vrsqrt.f32 %v390_v27  ;;  %v384_v35 = vmax.f32 %v376_v28, 0.0  ;;  %v899_v37 = vpop.f32.mrf.mxu0  ;;  %v927_v45 = vpop.f32.mrf.mxu1  ;;  %v686_v60 = vmul.f32 %v1357_v41, %v1322_v42  ;;  %v685_v0 = vmul.f32 %v1357_v41, %v1324_v44 }
  0xe9   : > { %984 = vrsqrt.f32 %v389_v31  ;;  %v383_v39 = vmax.f32 %v375_v32, 0.0  ;;  %v361_v43 = vmul.f32 0.0078125, %v345_v33  ;;  %v378_v46 = vsub.f32 %v362_v36, %v370_v34 }
  0xea   : > { %v392_v40 = vadd.f32 1e-05, %v384_v35  ;;  %v510_v47 = vpop.f32.mrf.mxu0  ;;  %v639_v50 = vpop.f32.mrf.mxu1  ;;  %v645_v52 = vadd.f32 %v927_v45, %v899_v37  ;;  %v688_v44 = vmul.f32 %v1357_v41, %v1328_v53  ;;  %v687_v13 = vmul.f32 %v1357_v41, %v1332_v56 }
  0xeb   : > { %v391_v48 = vadd.f32 1e-05, %v383_v39  ;;  %v377_v49 = vsub.f32 %v361_v43, %v369_v38  ;;  %v386_v51 = vmax.f32 %v378_v46, 0.0  ;;  %v640_v57 = vadd.f32 %v639_v50, %v510_v47 }
  0xec   : > { %986 = vrsqrt.f32 %v392_v40  ;;  %v902_v54 = vpop.f32.mrf.mxu0  ;;  %v930_v58 = vpop.f32.mrf.mxu1  ;;  %v694_v3 = vsub.f32 %v645_v52, %v686_v60  ;;  %v690_v53 = vmul.f32 %v1357_v41, %v1334_v59  ;;  %v689_v29 = vmul.f32 %v1357_v41, %v1336_v63 }
  0xed   : > { %988 = vrsqrt.f32 %v391_v48  ;;  %v385_v55 = vmax.f32 %v377_v49, 0.0  ;;  %v394_v61 = vadd.f32 1e-05, %v386_v51  ;;  %v655_v4 = vadd.f32 %v930_v58, %v902_v54 }
  0xee   : > { %v520_v62 = vpop.f32.mrf.mxu0  ;;  %v649_v2 = vpop.f32.mrf.mxu1  ;;  %v693_v42 = vsub.f32 %v640_v57, %v685_v0  ;;  %v692_v39 = vmul.f32 %v1357_v41, %v1346_v20  ;;  %v691_v43 = vmul.f32 %v1357_v41, %v1348_v23 }
  0xef   : > { %v393_v1 = vadd.f32 1e-05, %v385_v55  ;;  %990 = vrsqrt.f32 %v394_v61  ;;  %v650_v8 = vadd.f32 %v649_v2, %v520_v62  ;;  %v696_v17 = vsub.f32 %v655_v4, %v688_v44 }
  0xf0   : > { %v905_v5 = vpop.f32.mrf.mxu0  ;;  %v979_v6 = vpop.eup %978 }
  0xf1   : > { %992 = vrsqrt.f32 %v393_v1  ;;  %v933_v9 = vpop.f32.mrf.mxu1  ;;  %v702_v11 = vmul.f32 %v979_v6, %v694_v3  ;;  %v695_v24 = vsub.f32 %v650_v8, %v687_v13 }
  0xf2   : > { %v981_v10 = vpop.eup %980  ;;  %v530_v12 = vpop.f32.mrf.mxu0  ;;  %v665_v18 = vadd.f32 %v933_v9, %v905_v5 }
  0xf3   : > { %v701_v14 = vmul.f32 %v981_v10, %v693_v42  ;;  %v659_v15 = vpop.f32.mrf.mxu1  ;;  %v717_v16 = vadd.f32 %v841_v7, %v702_v11 }
  0xf4   : > { %v908_v19 = vpop.f32.mrf.mxu0  ;;  %v660_v25 = vadd.f32 %v659_v15, %v530_v12  ;;  %v698_v33 = vsub.f32 %v665_v18, %v690_v53 }
  0xf5   : > { %v983_v21 = vpop.eup %982  ;;  %v716_v22 = vadd.f32 %v841_v7, %v701_v14  ;;  %v936_v26 = vpop.f32.mrf.mxu1  ;;  %725 = vst.msk [vmem:[%s1375_s10 + $0x8] sm:$0xff] %vm218_vm0, %v717_v16 }
  0xf6   : > { %v985_v27 = vpop.eup %984  ;;  %v704_v56 = vmul.f32 %v983_v21, %v696_v17  ;;  %v540_v28 = vpop.f32.mrf.mxu0  ;;  %v675_v59 = vadd.f32 %v936_v26, %v908_v19  ;;  %v697_v36 = vsub.f32 %v660_v25, %v689_v29 }
  0xf7   : > { %724 = vst.msk [vmem:[%s1375_s10] sm:$0xff] %vm218_vm0, %v716_v22  ;;  %v703_v30 = vmul.f32 %v985_v27, %v695_v24  ;;  %v669_v31 = vpop.f32.mrf.mxu1 }
  0xf8   : > { %v719_v32 = vadd.f32 %v841_v7, %v704_v56  ;;  %v670_v37 = vadd.f32 %v669_v31, %v540_v28  ;;  %v700_v46 = vsub.f32 %v675_v59, %v692_v39 }
  0xf9   : > { %v987_v34 = vpop.eup %986  ;;  %v718_v35 = vadd.f32 %v841_v7, %v703_v30 }
  0xfa   : > { %v989_v38 = vpop.eup %988  ;;  %727 = vst.msk [vmem:[%s1375_s10 + $0x18] sm:$0xff] %vm218_vm0, %v719_v32  ;;  %v706_v63 = vmul.f32 %v987_v34, %v698_v33  ;;  %v699_v49 = vsub.f32 %v670_v37, %v691_v43 }
  0xfb   : > { %726 = vst.msk [vmem:[%s1375_s10 + $0x10] sm:$0xff] %vm218_vm0, %v718_v35  ;;  %v705_v45 = vmul.f32 %v989_v38, %v697_v36 }
  0xfc   : > { %v721_v40 = vadd.f32 %v841_v7, %v706_v63  ;;  %v991_v47 = vpop.eup %990 }
  0xfd   : > { %v720_v48 = vadd.f32 %v841_v7, %v705_v45  ;;  %v708_v50 = vmul.f32 %v991_v47, %v700_v46 }
  0xfe   : > { %v993_v20 = vpop.eup %992  ;;  %729 = vst.msk [vmem:[%s1375_s10 + $0x28] sm:$0xff] %vm218_vm0, %v721_v40 }
  0xff   : > { %728 = vst.msk [vmem:[%s1375_s10 + $0x20] sm:$0xff] %vm218_vm0, %v720_v48  ;;  %v707_v23 = vmul.f32 %v993_v20, %v699_v49  ;;  %v723_v41 = vadd.f32 %v841_v7, %v708_v50 }
 0x101   : > { %v722_v51 = vadd.f32 %v841_v7, %v707_v23  ;;  %731 = vst.msk [vmem:[%s1375_s10 + $0x38] sm:$0xff] %vm218_vm0, %v723_v41 }
 0x103   : > { %730 = vst.msk [vmem:[%s1375_s10 + $0x30] sm:$0xff] %vm218_vm0, %v722_v51 }
 0x104   : > { %1007 = shalt.err (!%p1004_p3)
}
 0x105   : > { %s1008_s29 = scalar_lea.hbm %s1400_s20, 1024  ;;  %s1012_s6 = scalar_lea.hbm %s1454_s4, 2048 }
 0x106   : > { %p1009_p4 = scmp.ne.s32.totalorder %s1400_s20, %s1008_s29  ;;  %p1013_p9 = scmp.lt.s32.totalorder %s1400_s20, %s1454_s4 }
 0x107   : > { %p1014_p10 = scmp.lt.s32.totalorder %s1012_s6, %s1008_s29 }
 0x108   : > { %p1010_p7 = pnand %p1009_p4, %p1122_p5 }
 0x109   : > { %p1015_p11 = por %p1014_p10, %p1013_p9 }
 0x10a   : > { %p1011_p8 = pneg %p1010_p7 }
 0x10c   : > { %p1016_p12 = pnand %p1015_p11, %p1011_p8 }
 0x10e   : > { %1019 = shalt.err (!%p1016_p12)
}
 0x10f   : > { %s1057_s7 = smov 128   ;;  %s1058_s10 = smov 8  }
 0x110   : > { %937 = dma.vmem_to_hbm [thread:$0]  (%p1122_p5), %s1402_s12, 1024, %s1400_s20, %s1410_s19, %s1057_s7, %s1057_s7, %s1058_s10  }
 0x111 PF: > { %p943_p13 = scmp.ge.s32.totalorder %s1054_s18, 2  ;;  %s761_s11 = sand.u32 1, %s1042_s15  }
 0x112   : > { %s762_s13 = scalar_lea.sflag [#allocation3], %s761_s11 }
 0x113   : > { %p940_p0 = pnand %p943_p13, %p1126_p6 }
 0x115   : > { %p941_p1 = pneg %p940_p0 }
 0x117   : > { %1037 = dma.done.wait (%p941_p1), %s762_s13, 1024  }
 0x118   : > { %1039 = vsyncadd (%p941_p1), %s762_s13, 4294966272  ;;  %p14_p2 = scmp.ge.s32.totalorder %s1109_s21, 4   ;;  %s1457_s15 = smov %s1046_s16 }
 0x119   : > { %s1458_s16 = smov %s1050_s17  ;;  %s1459_s17 = smov %s1120_s24 }
 0x11a   : > { %s1460_s18 = smov %s1109_s21  ;;  %16 = sbr.rel (!%p14_p2) target bundleno = 3 (0x3), region = 72 }
 0x11f   :  { %767 = vsyncpa [#allocation3], 1 }
 0x120   :  { %769 = vsyncpa [#allocation3 + $0x1], 1 }

</bundles_post_ra>
